<compile_context>
chip_gen: v7x
topology: tpu7x:2x2x1
jax: 0.10.0
libtpu: 0.0.40
codegen_flags: <defaults>
</compile_context>

<pallas_src>
import jax
import jax.numpy as jnp
from jax import lax
from jax.experimental import pallas as pl
from jax.experimental.pallas import tpu as pltpu


def _make_fasttext_kernel(L, TB):
    """Build the kernel with the (static) sequence length and batch tile baked in."""

    def kernel(xidx_ref,            # SMEM  [B*L] int32 (scalar prefetch, flattened ids)
               xlen_ref,            # VMEM  [TB, 1] f32
               table_ref,           # VMEM  [V, D] f32 (resident embedding table)
               w1_ref, b1_ref,      # VMEM  [D, H], [1, H]   (BN folded in)
               w2_ref, b2_ref,      # VMEM  [H, CP], [1, CP] (class-padded)
               out_ref,             # VMEM  [TB, CP]
               pool_ref):           # VMEM scratch [TB, D] f32
        bt = pl.program_id(0)
        _, D = pool_ref.shape

        # Embedding gather + sum-pool, entirely from the VMEM-resident table
        # (no DMAs).  Padding positions hold token id 0 and therefore index
        # table row 0, exactly like PyTorch's Embedding(padding_idx=0) forward.
        @pl.loop(0, TB)
        def _(r):
            base = (bt * TB + r) * L

            def tok_body(l, acc):
                tok = xidx_ref[base + l]
                return acc + table_ref[pl.ds(tok, 1), :]

            acc = lax.fori_loop(0, L, tok_body,
                                jnp.zeros((1, D), jnp.float32),
                                unroll=(L <= 16))
            pool_ref[pl.ds(r, 1), :] = acc

        # Dropout(p=0.5) is identity in eval mode.
        pooled = pool_ref[...]                                    # [TB, D]
        inv_len = pl.reciprocal(xlen_ref[...], approx=False)      # [TB, 1]

        # fc[0] Linear + fc[1] BatchNorm1d (folded into w1/b1).  The per-row
        # 1/x_len normalization commutes with the matmul, so apply it on the
        # [TB, H] activations instead of [TB, D].
        h = jnp.dot(pooled, w1_ref[...], preferred_element_type=jnp.float32)
        h = h * inv_len + b1_ref[...]
        h = jnp.maximum(h, 0.0)                                   # fc[2] ReLU

        # fc[3] Linear(128, C) on class-padded (lane-dense) weights.
        logits = (jnp.dot(h, w2_ref[...], preferred_element_type=jnp.float32)
                  + b2_ref[...])

        # log_softmax over the 128 padded lanes (padded columns carry a -1e30
        # bias, so their exp underflows to exactly 0 and they don't perturb it).
        m = jnp.max(logits, axis=1, keepdims=True)
        z = logits - m
        lse = jnp.log(jnp.sum(jnp.exp(z), axis=1, keepdims=True))
        out_ref[...] = z - lse

    return kernel


def _pick_batch_tile(B):
    # Largest power-of-two tile that keeps >= 2 grid steps (v7x megacore sharding)
    # while amortizing per-grid-step overhead and filling the MXU.
    for cand in (256, 128, 64, 32, 16, 8):
        if B % cand == 0 and B // cand >= 2:
            return cand
    return B


def fasttext_forward(x_idx, x_len, params, *, tb=None):
    """x_idx: [B, L] int32 token ids (0 = padding); x_len: [B] lengths."""
    emb_table = params["emb_table"]                       # [V, D]
    B, L = x_idx.shape
    V, D = emb_table.shape
    H = params["w1"].shape[1]
    C = params["b2"].shape[-1]
    CP = 128                                              # lane-dense padded class dim

    if tb is None:
        tb = _pick_batch_tile(B)
    assert B % tb == 0, "pad the batch to a multiple of the batch tile"

    # Fold BatchNorm1d (inference, running stats) into the first Linear.
    eps = 1e-5
    scale = params["gamma"] / jnp.sqrt(params["rvar"] + eps)            # [1, H]
    w1_f = params["w1"] * scale                                         # [D, H]
    b1_f = (params["b1"] - params["rmean"]) * scale + params["beta"]    # [1, H]

    # Pad the classifier to 128 output lanes; padded logits get a -1e30 bias.
    w2_p = jnp.zeros((H, CP), jnp.float32).at[:, :C].set(params["w2"])
    b2_p = jnp.full((1, CP), -1e30, jnp.float32).at[:, :C].set(params["b2"])

    xlen_f = x_len.astype(jnp.float32).reshape(B, 1)
    xidx_flat = x_idx.astype(jnp.int32).reshape(B * L)    # 1-D SMEM prefetch (no 128-lane pad)

    # VMEM budget check for the resident-table path (conservative for v7x 64 MiB).
    f32b = 4
    resident_bytes = (V * D + D * H + H + H * CP + CP) * f32b
    tile_bytes = (tb * D + tb * 1 + tb * CP) * f32b
    vmem_est = 2 * (resident_bytes + tile_bytes) + tb * D * f32b
    assert vmem_est < 40 * 1024 * 1024, (
        "embedding table too large for the VMEM-resident gather path; "
        "use an HBM-streaming staged gather instead")
    vmem_limit = min(60 << 20, max(32 << 20, vmem_est + (4 << 20)))

    out_padded = pl.pallas_call(
        _make_fasttext_kernel(L, tb),
        out_shape=jax.ShapeDtypeStruct((B, CP), jnp.float32),
        grid_spec=pltpu.PrefetchScalarGridSpec(
            num_scalar_prefetch=1,                              # flattened x_idx -> SMEM
            grid=(B // tb,),
            in_specs=[
                pl.BlockSpec((tb, 1), lambda i, idx: (i, 0)),   # x_len tile
                pl.BlockSpec((V, D), lambda i, idx: (0, 0)),    # embedding table, resident
                pl.BlockSpec((D, H), lambda i, idx: (0, 0)),    # w1 (BN folded), resident
                pl.BlockSpec((1, H), lambda i, idx: (0, 0)),    # b1 (BN folded), resident
                pl.BlockSpec((H, CP), lambda i, idx: (0, 0)),   # w2 (class-padded), resident
                pl.BlockSpec((1, CP), lambda i, idx: (0, 0)),   # b2 (class-padded), resident
            ],
            out_specs=pl.BlockSpec((tb, CP), lambda i, idx: (i, 0)),
            scratch_shapes=[
                pltpu.VMEM((tb, D), jnp.float32),               # pooled embedding sums
            ],
        ),
        compiler_params=pltpu.CompilerParams(
            dimension_semantics=("parallel",),                  # megacore sharding on v7x
            vmem_limit_bytes=vmem_limit,
        ),
    )(xidx_flat, xlen_f, emb_table.astype(jnp.float32), w1_f, b1_f, w2_p, b2_p)

    return out_padded[:, :C]


def make_params(key, word_size, emb_dim, hidden, n_classes):
    k = jax.random.split(key, 8)
    emb_table = 0.1 * jax.random.normal(k[0], (word_size, emb_dim), jnp.float32)
    emb_table = emb_table.at[0].set(0.0)             # padding_idx=0
    w1 = 0.05 * jax.random.normal(k[1], (emb_dim, hidden), jnp.float32)
    b1 = 0.05 * jax.random.normal(k[2], (1, hidden), jnp.float32)
    gamma = 1.0 + 0.1 * jax.random.normal(k[3], (1, hidden), jnp.float32)
    beta = 0.1 * jax.random.normal(k[4], (1, hidden), jnp.float32)
    rmean = 0.05 * jax.random.normal(k[5], (1, hidden), jnp.float32)
    rvar = jnp.abs(1.0 + 0.1 * jax.random.normal(k[6], (1, hidden), jnp.float32))
    w2 = 0.05 * jax.random.normal(k[7], (hidden, n_classes), jnp.float32)
    b2 = jnp.zeros((1, n_classes), jnp.float32)
    return dict(emb_table=emb_table, w1=w1, b1=b1, gamma=gamma, beta=beta,
                rmean=rmean, rvar=rvar, w2=w2, b2=b2)


def reference_forward(x_idx, x_len, params):
    """Pure-JAX reference mirroring the PyTorch eval-mode forward."""
    emb = jnp.take(params["emb_table"], x_idx, axis=0)
    pooled = jnp.sum(emb, axis=1) / x_len.astype(jnp.float32)[:, None]
    h = pooled @ params["w1"] + params["b1"]
    h = (h - params["rmean"]) / jnp.sqrt(params["rvar"] + 1e-5) * params["gamma"] + params["beta"]
    h = jnp.maximum(h, 0.0)
    logits = h @ params["w2"] + params["b2"]
    return jax.nn.log_softmax(logits, axis=1)


if __name__ == "__main__":
    # Small, module-consistent shapes (B chosen so the grid has >= 2 batch tiles).
    word_size, emb_dim, hidden, n_classes = 64, 256, 128, 4
    B, L = 32, 8

    key = jax.random.PRNGKey(0)
    kp, ki, kl = jax.random.split(key, 3)
    params = make_params(kp, word_size, emb_dim, hidden, n_classes)

    # Random token ids in [1, V), per-example lengths; tail positions padded with 0.
    x_len = jax.random.randint(kl, (B,), 3, L + 1, dtype=jnp.int32)        # lengths in [3, L]
    x_idx = jax.random.randint(ki, (B, L), 1, word_size, dtype=jnp.int32)
    pos = jnp.arange(L)[None, :]
    x_idx = jnp.where(pos < x_len[:, None], x_idx, 0)                      # padding_idx = 0

    out = fasttext_forward(x_idx, x_len, params)
    out = jax.block_until_ready(out)

    ref = reference_forward(x_idx, x_len, params)
    assert out.shape == (B, n_classes)
    assert jnp.allclose(out, ref, atol=1e-4, rtol=1e-4), "mismatch vs reference"
    print("KERNEL_OK")
</pallas_src>

<mosaic_0001>
module attributes {stable_mosaic.version = 11 : i64} {
  func.func @kernel(%arg0: i32, %arg1: memref<256xi32, #tpu.memory_space<smem>>, %arg2: memref<16x1xf32, #tpu.memory_space<vmem>>, %arg3: memref<64x256xf32, #tpu.memory_space<vmem>>, %arg4: memref<256x128xf32, #tpu.memory_space<vmem>>, %arg5: memref<1x128xf32, #tpu.memory_space<vmem>>, %arg6: memref<128x128xf32, #tpu.memory_space<vmem>>, %arg7: memref<1x128xf32, #tpu.memory_space<vmem>>, %arg8: memref<16x128xf32, #tpu.memory_space<vmem>>, %arg9: memref<16x256xf32, #tpu.memory_space<vmem>>) attributes {dimension_semantics = [#tpu.dimension_semantics<parallel>], iteration_bounds = array<i64: 2>, scalar_prefetch = 1 : i64, scratch_operands = 1 : i64, tpu.core_type = #tpu.core_type<tc>, window_params = [{transform_indices = @transform_0, window_bounds = array<i64: 16, 1>}, {pipeline_mode = #tpu.pipeline_mode<synchronous>, transform_indices = @transform_1, window_bounds = array<i64: 64, 256>}, {pipeline_mode = #tpu.pipeline_mode<synchronous>, transform_indices = @transform_2, window_bounds = array<i64: 256, 128>}, {pipeline_mode = #tpu.pipeline_mode<synchronous>, transform_indices = @transform_3, window_bounds = array<i64: 1, 128>}, {pipeline_mode = #tpu.pipeline_mode<synchronous>, transform_indices = @transform_4, window_bounds = array<i64: 128, 128>}, {pipeline_mode = #tpu.pipeline_mode<synchronous>, transform_indices = @transform_5, window_bounds = array<i64: 1, 128>}, {transform_indices = @transform_6, window_bounds = array<i64: 16, 128>}]} {
    %c0_i32 = arith.constant 0 : i32
    %c16_i32 = arith.constant 16 : i32
    %0 = arith.addi %c0_i32, %c16_i32 : i32
    %c1_i32 = arith.constant 1 : i32
    scf.for %arg10 = %c0_i32 to %0 step %c1_i32  : i32 {
      %c1_i32_18 = arith.constant 1 : i32
      %29 = arith.muli %arg10, %c1_i32_18 : i32
      %c0_i32_19 = arith.constant 0 : i32
      %30 = arith.addi %c0_i32_19, %29 : i32
      %c16_i32_20 = arith.constant 16 : i32
      %31 = arith.muli %arg0, %c16_i32_20 : i32
      %32 = arith.addi %31, %30 : i32
      %c8_i32 = arith.constant 8 : i32
      %33 = arith.muli %32, %c8_i32 : i32
      %cst_21 = arith.constant 0.000000e+00 : f32
      %34 = vector.broadcast %cst_21 : f32 to vector<1x256xf32>
      %c0_i32_22 = arith.constant 0 : i32
      %35 = arith.addi %33, %c0_i32_22 : i32
      %36 = arith.index_cast %35 : i32 to index
      %37 = memref.load %arg1[%36] : memref<256xi32, #tpu.memory_space<smem>>
      %38 = arith.index_cast %37 : i32 to index
      %c0_23 = arith.constant 0 : index
      %39 = vector.load %arg3[%38, %c0_23] : memref<64x256xf32, #tpu.memory_space<vmem>>, vector<1x256xf32>
      %40 = arith.addf %34, %39 : vector<1x256xf32>
      %c1_i32_24 = arith.constant 1 : i32
      %41 = arith.addi %33, %c1_i32_24 : i32
      %42 = arith.index_cast %41 : i32 to index
      %43 = memref.load %arg1[%42] : memref<256xi32, #tpu.memory_space<smem>>
      %44 = arith.index_cast %43 : i32 to index
      %c0_25 = arith.constant 0 : index
      %45 = vector.load %arg3[%44, %c0_25] : memref<64x256xf32, #tpu.memory_space<vmem>>, vector<1x256xf32>
      %46 = arith.addf %40, %45 : vector<1x256xf32>
      %c2_i32 = arith.constant 2 : i32
      %47 = arith.addi %33, %c2_i32 : i32
      %48 = arith.index_cast %47 : i32 to index
      %49 = memref.load %arg1[%48] : memref<256xi32, #tpu.memory_space<smem>>
      %50 = arith.index_cast %49 : i32 to index
      %c0_26 = arith.constant 0 : index
      %51 = vector.load %arg3[%50, %c0_26] : memref<64x256xf32, #tpu.memory_space<vmem>>, vector<1x256xf32>
      %52 = arith.addf %46, %51 : vector<1x256xf32>
      %c3_i32 = arith.constant 3 : i32
      %53 = arith.addi %33, %c3_i32 : i32
      %54 = arith.index_cast %53 : i32 to index
      %55 = memref.load %arg1[%54] : memref<256xi32, #tpu.memory_space<smem>>
      %56 = arith.index_cast %55 : i32 to index
      %c0_27 = arith.constant 0 : index
      %57 = vector.load %arg3[%56, %c0_27] : memref<64x256xf32, #tpu.memory_space<vmem>>, vector<1x256xf32>
      %58 = arith.addf %52, %57 : vector<1x256xf32>
      %c4_i32 = arith.constant 4 : i32
      %59 = arith.addi %33, %c4_i32 : i32
      %60 = arith.index_cast %59 : i32 to index
      %61 = memref.load %arg1[%60] : memref<256xi32, #tpu.memory_space<smem>>
      %62 = arith.index_cast %61 : i32 to index
      %c0_28 = arith.constant 0 : index
      %63 = vector.load %arg3[%62, %c0_28] : memref<64x256xf32, #tpu.memory_space<vmem>>, vector<1x256xf32>
      %64 = arith.addf %58, %63 : vector<1x256xf32>
      %c5_i32 = arith.constant 5 : i32
      %65 = arith.addi %33, %c5_i32 : i32
      %66 = arith.index_cast %65 : i32 to index
      %67 = memref.load %arg1[%66] : memref<256xi32, #tpu.memory_space<smem>>
      %68 = arith.index_cast %67 : i32 to index
      %c0_29 = arith.constant 0 : index
      %69 = vector.load %arg3[%68, %c0_29] : memref<64x256xf32, #tpu.memory_space<vmem>>, vector<1x256xf32>
      %70 = arith.addf %64, %69 : vector<1x256xf32>
      %c6_i32 = arith.constant 6 : i32
      %71 = arith.addi %33, %c6_i32 : i32
      %72 = arith.index_cast %71 : i32 to index
      %73 = memref.load %arg1[%72] : memref<256xi32, #tpu.memory_space<smem>>
      %74 = arith.index_cast %73 : i32 to index
      %c0_30 = arith.constant 0 : index
      %75 = vector.load %arg3[%74, %c0_30] : memref<64x256xf32, #tpu.memory_space<vmem>>, vector<1x256xf32>
      %76 = arith.addf %70, %75 : vector<1x256xf32>
      %c7_i32 = arith.constant 7 : i32
      %77 = arith.addi %33, %c7_i32 : i32
      %78 = arith.index_cast %77 : i32 to index
      %79 = memref.load %arg1[%78] : memref<256xi32, #tpu.memory_space<smem>>
      %80 = arith.index_cast %79 : i32 to index
      %c0_31 = arith.constant 0 : index
      %81 = vector.load %arg3[%80, %c0_31] : memref<64x256xf32, #tpu.memory_space<vmem>>, vector<1x256xf32>
      %82 = arith.addf %76, %81 : vector<1x256xf32>
      %c8_i32_32 = arith.constant 8 : i32
      %83 = arith.index_cast %30 : i32 to index
      %c0_33 = arith.constant 0 : index
      %84 = vector.load %arg9[%83, %c0_33] : memref<16x256xf32, #tpu.memory_space<vmem>>, vector<1x256xf32>
      tpu.vector_store %arg9[%83, %c0_33], %82 {strides = array<i32>} : memref<16x256xf32, #tpu.memory_space<vmem>>, vector<1x256xf32>,
    }
    %c16_i32_0 = arith.constant 16 : i32
    %c0 = arith.constant 0 : index
    %c0_1 = arith.constant 0 : index
    %1 = vector.load %arg9[%c0, %c0_1] : memref<16x256xf32, #tpu.memory_space<vmem>>, vector<16x256xf32>
    %c0_2 = arith.constant 0 : index
    %c0_3 = arith.constant 0 : index
    %2 = vector.load %arg2[%c0_2, %c0_3] : memref<16x1xf32, #tpu.memory_space<vmem>>, vector<16x1xf32>
    %3 = tpu.reciprocal %2 : vector<16x1xf32> -> vector<16x1xf32>
    %c0_4 = arith.constant 0 : index
    %c0_5 = arith.constant 0 : index
    %4 = vector.load %arg4[%c0_4, %c0_5] : memref<256x128xf32, #tpu.memory_space<vmem>>, vector<256x128xf32>
    %cst = arith.constant dense<0.000000e+00> : vector<16x128xf32>
    %5 = tpu.matmul %1, %4, %cst {dimension_numbers = #tpu.dot_dimension_numbers<[1], [0], [0], [1], [0, 0, 1, 1], [], []>} : vector<16x256xf32>, vector<256x128xf32>, vector<16x128xf32> -> vector<16x128xf32>
    %6 = vector.broadcast %3 : vector<16x1xf32> to vector<16x128xf32>
    %7 = arith.mulf %5, %6 : vector<16x128xf32>
    %c0_6 = arith.constant 0 : index
    %c0_7 = arith.constant 0 : index
    %8 = vector.load %arg5[%c0_6, %c0_7] : memref<1x128xf32, #tpu.memory_space<vmem>>, vector<1x128xf32>
    %9 = vector.broadcast %8 : vector<1x128xf32> to vector<16x128xf32>
    %10 = arith.addf %7, %9 : vector<16x128xf32>
    %cst_8 = arith.constant 0.000000e+00 : f32
    %11 = vector.broadcast %cst_8 : f32 to vector<16x128xf32>
    %12 = arith.maximumf %10, %11 : vector<16x128xf32>
    %c0_9 = arith.constant 0 : index
    %c0_10 = arith.constant 0 : index
    %13 = vector.load %arg6[%c0_9, %c0_10] : memref<128x128xf32, #tpu.memory_space<vmem>>, vector<128x128xf32>
    %cst_11 = arith.constant dense<0.000000e+00> : vector<16x128xf32>
    %14 = tpu.matmul %12, %13, %cst_11 {dimension_numbers = #tpu.dot_dimension_numbers<[1], [0], [0], [1], [0, 0, 1, 1], [], []>} : vector<16x128xf32>, vector<128x128xf32>, vector<16x128xf32> -> vector<16x128xf32>
    %c0_12 = arith.constant 0 : index
    %c0_13 = arith.constant 0 : index
    %15 = vector.load %arg7[%c0_12, %c0_13] : memref<1x128xf32, #tpu.memory_space<vmem>>, vector<1x128xf32>
    %16 = vector.broadcast %15 : vector<1x128xf32> to vector<16x128xf32>
    %17 = arith.addf %14, %16 : vector<16x128xf32>
    %cst_14 = arith.constant dense<0xFF800000> : vector<16xf32>
    %18 = vector.multi_reduction <maximumf>, %17, %cst_14 [1] : vector<16x128xf32> to vector<16xf32>
    %19 = vector.shape_cast %18 : vector<16xf32> to vector<16x1xf32>
    %20 = vector.broadcast %19 : vector<16x1xf32> to vector<16x128xf32>
    %21 = arith.subf %17, %20 : vector<16x128xf32>
    %22 = math.exp %21 : vector<16x128xf32>
    %cst_15 = arith.constant dense<0.000000e+00> : vector<16xf32>
    %23 = vector.multi_reduction <add>, %22, %cst_15 [1] : vector<16x128xf32> to vector<16xf32>
    %24 = vector.shape_cast %23 : vector<16xf32> to vector<16x1xf32>
    %25 = math.log %24 : vector<16x1xf32>
    %26 = vector.broadcast %25 : vector<16x1xf32> to vector<16x128xf32>
    %27 = arith.subf %21, %26 : vector<16x128xf32>
    %c0_16 = arith.constant 0 : index
    %c0_17 = arith.constant 0 : index
    %28 = vector.load %arg8[%c0_16, %c0_17] : memref<16x128xf32, #tpu.memory_space<vmem>>, vector<16x128xf32>
    tpu.vector_store %arg8[%c0_16, %c0_17], %27 {strides = array<i32>} : memref<16x128xf32, #tpu.memory_space<vmem>>, vector<16x128xf32>,
    return
  }
  func.func @transform_0(%arg0: i32, %arg1: memref<256xi32, #tpu.memory_space<smem>>) -> (i32, i32) {
    %c0_i32 = arith.constant 0 : i32
    %c0_i32_0 = arith.constant 0 : i32
    return %arg0, %c0_i32 : i32, i32
  }
  func.func @transform_1(%arg0: i32, %arg1: memref<256xi32, #tpu.memory_space<smem>>) -> (i32, i32) {
    %c0_i32 = arith.constant 0 : i32
    %c0_i32_0 = arith.constant 0 : i32
    %c0_i32_1 = arith.constant 0 : i32
    return %c0_i32, %c0_i32_0 : i32, i32
  }
  func.func @transform_2(%arg0: i32, %arg1: memref<256xi32, #tpu.memory_space<smem>>) -> (i32, i32) {
    %c0_i32 = arith.constant 0 : i32
    %c0_i32_0 = arith.constant 0 : i32
    %c0_i32_1 = arith.constant 0 : i32
    return %c0_i32, %c0_i32_0 : i32, i32
  }
  func.func @transform_3(%arg0: i32, %arg1: memref<256xi32, #tpu.memory_space<smem>>) -> (i32, i32) {
    %c0_i32 = arith.constant 0 : i32
    %c0_i32_0 = arith.constant 0 : i32
    %c0_i32_1 = arith.constant 0 : i32
    return %c0_i32, %c0_i32_0 : i32, i32
  }
  func.func @transform_4(%arg0: i32, %arg1: memref<256xi32, #tpu.memory_space<smem>>) -> (i32, i32) {
    %c0_i32 = arith.constant 0 : i32
    %c0_i32_0 = arith.constant 0 : i32
    %c0_i32_1 = arith.constant 0 : i32
    return %c0_i32, %c0_i32_0 : i32, i32
  }
  func.func @transform_5(%arg0: i32, %arg1: memref<256xi32, #tpu.memory_space<smem>>) -> (i32, i32) {
    %c0_i32 = arith.constant 0 : i32
    %c0_i32_0 = arith.constant 0 : i32
    %c0_i32_1 = arith.constant 0 : i32
    return %c0_i32, %c0_i32_0 : i32, i32
  }
  func.func @transform_6(%arg0: i32, %arg1: memref<256xi32, #tpu.memory_space<smem>>) -> (i32, i32) {
    %c0_i32 = arith.constant 0 : i32
    %c0_i32_0 = arith.constant 0 : i32
    return %arg0, %c0_i32 : i32, i32
  }
}

</mosaic_0001>

<bundles_post_ra>
// kernel: tpu_custom_call.1
= control target key start
LH: loop header
LB: loop body
LE: loop exit
PB: predicated region body
PF: predicated region fallthrough
CT: control target
= control target key end

     0   :  { %s1609_s0 = inlined_call_operand.vmem [shape: s32[256], index: 0, kind: input, shape index: {}]   ;;  %s1610_s1 = inlined_call_operand.vmem [shape: f32[32,1], index: 1, kind: input, shape index: {}]   ;;  %s1611_s2 = inlined_call_operand.hbm [shape: f32[64,256], index: 2, kind: input, shape index: {}]   ;;  %s1612_s3 = inlined_call_operand.hbm [shape: f32[256,128], index: 3, kind: input, shape index: {}]   ;;  %s1613_s4 = inlined_call_operand.vmem [shape: f32[1,128], index: 4, kind: input, shape index: {}]   ;;  %s1614_s5 = inlined_call_operand.hbm [shape: f32[128,128], index: 5, kind: input, shape index: {}]   ;;  %s1615_s6 = inlined_call_operand.vmem [shape: f32[1,128], index: 6, kind: input, shape index: {}]   ;;  %s1616_s7 = inlined_call_operand.hbm [shape: f32[32,128], index: 7, kind: output, shape index: {}]  }
   0x1   :  { %1629 = sst [smem:[#allocation22_spill]] %s1610_s1  ;;  %s12_s26 = sshll.u32 %s1609_s0, 4  ;;  %s13_s26 = int_to_ptr.vmem [resolvable:$true] %s12_s26 }
   0x2   :  { %1630 = sst [smem:[#allocation23_spill]] %s1611_s2  ;;  %s1123_s27 = scalar_lea.vmem %s13_s26, 32 }
   0x3   :  { %1631 = sst [smem:[#allocation24_spill]] %s1612_s3  ;;  %p1124_p0 = scmp.ne.s32.totalorder %s13_s26, %s1123_s27 }
   0x4   :  { %1632 = sst [smem:[#allocation25_spill]] %s1614_s5  ;;  %p1128_p1 = scmp.lt.s32.totalorder %s13_s26, %s13_s26 }
   0x5   :  { %p1129_p2 = scmp.lt.s32.totalorder %s1123_s27, %s1123_s27 }
   0x7   :  { %p1130_p3 = por %p1129_p2, %p1128_p1 }
   0x9   :  { %p1131_p4 = pnand %p1130_p3, %p1124_p0 }
   0xb   :  { %1134 = shalt.err (!%p1131_p4)  }
   0xc   :  { %s1301_s28 = smov [#allocation4]  }
   0xd   :  { %15 = dma.vmem_to_smem %s13_s26, 32, %s1301_s28, [#allocation3] }
   0xe   :  { %1267 = dma.done.wait [#allocation3], 32 }
   0xf   :  { %1268 = vsyncadd [#allocation3], 4294967264 }
  0x10   :  { %17 = sfence }
  0x11   :  { %18 = vsyncpa [#allocation6], 0 }
  0x12   :  { %19 = vsyncpa [#allocation9], 0 }
  0x13   :  { %20 = vsyncpa [#allocation7], 0 }
  0x14   :  { %22 = vsyncpa [#allocation7 + $0x1], 0  ;;  %s1356_s29 = smov 0   ;;  %s1358_s0 = smov 0  }
  0x15   :  { %s1360_s30 = smov 0   ;;  %s1362_s8 = smov 0  }
  0x16 LB: > { %1633 = sst [smem:[#allocation16_spill]] %s1283_s29  ;;  %s1377_s9 = sadd.s32 4294967295, %s1295_s8   ;;  %s1295_s8 = sphi %s1362_s8, %s1662_s8   ;;  %s1291_s30 = sphi %s1360_s30, %s1664_s30   ;;  %s1287_s0 = sphi %s1358_s0, %s1666_s0   ;;  %s1283_s29 = sphi %s1356_s29, %s1665_s29  }
  0x17   : > { %1634 = sst [smem:[#allocation17_spill]] %s1291_s30  ;;  %s819_s10 = sadd.s32 4294967294, %s1295_s8  }
  0x18   : > { %1635 = sst [smem:[#allocation18_spill]] %s1295_s8  ;;  %s1381_s11 = sadd.s32 1, %s1295_s8  }
  0x19   : > { %1636 = sst [smem:[#allocation19_spill]] %s1381_s11  ;;  %s166_s12 = sadd.s32 1, %s1291_s30 }
  0x1a   : > { %s163_s13 = ssub.s32 %s1295_s8, %s1381_s11  ;;  %p176_p5 = scmp.ne.s32.totalorder %s1291_s30, %s1287_s0 }
  0x1b   : > { %p164_p6 = scmp.eq.s32.totalorder %s163_s13, 0  ;;  %p177_p7 = scmp.eq.s32.totalorder %s1377_s9, 1 }
  0x1c   : > { %p182_p8 = scmp.ne.s32.totalorder %s1287_s0, %s1283_s29  ;;  %p183_p9 = scmp.eq.s32.totalorder %s819_s10, 1 }
  0x1d   : > { %s1392_s14 = scalar_select %p164_p6, %s1291_s30, %s166_s12  }
  0x1e   : > { %p1394_p10 = por %p177_p7, %p176_p5  ;;  %p1398_p11 = por %p183_p9, %p182_p8 }
  0x1f   : > { %1637 = sst [smem:[#allocation20_spill]] %s1392_s14  ;;  %p820_p12 = scmp.ge.s32.totalorder %s1295_s8, 1 }
  0x20   : > { %s1638_s15 = scalar_select %p1394_p10, 1, 0 }
  0x21   : > { %s1639_s16 = scalar_select %p1398_p11, 1, 0 }
  0x22   : > { %p190_p13 = scmp.lt.s32.totalorder %s1295_s8, 3  ;;  %p1617_p0 = scmp.eq.s32.totalorder %s1377_s9, 0 }
  0x23   : > { %1640 = sst [smem:[#allocation21_spill]] %s1639_s16  ;;  %s1302_s18 = smov [#allocation8]  }
  0x24   : > { %p1405_p1 = pnand %p820_p12, %p190_p13  ;;  %s215_s19 = sshll.u32 %s1302_s18, 4  ;;  %s216_s19 = int_to_ptr.vmem [resolvable:$true] %s215_s19 }
  0x25   : > { %s1303_s21 = smov [#allocation5]   ;;  %s1643_s3 = sld [smem:[#allocation24_spill]] }
  0x26   : > { %s1641_s17 = scalar_select %p1405_p1, 1, 0 }
  0x27   : > { %p1038_p2 = pneg %p1405_p1  ;;  %s202_s22 = sshll.u32 %s1303_s21, 4  ;;  %s1417_s22 = int_to_ptr.vmem [resolvable:$true] %s202_s22 }
  0x29   : > { %p1413_p3 = pnand %p1617_p0, %p1038_p2 }
  0x2b   : > { %s1135_s25 = scalar_lea.hbm %s1643_s3, 4096  ;;  %p1427_p5 = pneg %p1413_p3 }
  0x2c   : > { %p1136_p4 = scmp.ne.s32.totalorder %s1643_s3, %s1135_s25  ;;  %p1142_p8 = scmp.lt.u32.totalorder %s1135_s25, %s1643_s3 }
  0x2e   : > { %p1138_p6 = pnand %p1427_p5, %p1136_p4 }
  0x30   : > { %p1139_p7 = pneg %p1138_p6 }
  0x32   : > { %p1144_p9 = pnand %p1142_p8, %p1139_p7 }
  0x34   : > { %1147 = shalt.err (!%p1144_p9)
}
  0x35   : > { %s1148_s13 = scalar_lea.vmem %s216_s19, 4096  ;;  %p1156_p0 = scmp.lt.s32.totalorder %s216_s19, %s216_s19 }
  0x36   : > { %p1149_p12 = scmp.ne.s32.totalorder %s216_s19, %s1148_s13  ;;  %p1157_p11 = scmp.lt.s32.totalorder %s1148_s13, %s1148_s13 }
  0x38   : > { %p1151_p13 = pnand %p1149_p12, %p1427_p5  ;;  %p1158_p10 = por %p1157_p11, %p1156_p0 }
  0x3a   : > { %p1152_p2 = pneg %p1151_p13 }
  0x3c   : > { %p1159_p1 = pnand %p1158_p10, %p1152_p2 }
  0x3e   : > { %1162 = shalt.err (!%p1159_p1)
}
  0x3f   : > { %s1620_s18 = smov 128   ;;  %s1621_s21 = smov 8  }
  0x40   : > { %1044 = dma.hbm_to_vmem [thread:$0]  (!%p1413_p3), %s1643_s3, 4096, %s216_s19, [#allocation9], %s1620_s18, %s1620_s18, %s1621_s21  }
  0x41   : > { %s1645_s2 = sld [smem:[#allocation23_spill]] }
  0x47   : > { %s1163_s27 = scalar_lea.hbm %s1645_s2, 2048 }
  0x48   : > { %p1164_p10 = scmp.ne.s32.totalorder %s1645_s2, %s1163_s27  ;;  %p1170_p1 = scmp.lt.u32.totalorder %s1163_s27, %s1645_s2 }
  0x4a   : > { %p1166_p11 = pnand %p1164_p10, %p1427_p5 }
  0x4c   : > { %p1167_p0 = pneg %p1166_p11 }
  0x4e   : > { %p1172_p4 = pnand %p1170_p1, %p1167_p0 }
  0x50   : > { %1175 = shalt.err (!%p1172_p4)
}
  0x51   : > { %s1176_s19 = scalar_lea.vmem %s1417_s22, 2048  ;;  %p1184_p9 = scmp.lt.s32.totalorder %s1417_s22, %s1417_s22 }
  0x52   : > { %p1177_p6 = scmp.ne.s32.totalorder %s1417_s22, %s1176_s19  ;;  %p1185_p12 = scmp.lt.s32.totalorder %s1176_s19, %s1176_s19 }
  0x54   : > { %p1179_p7 = pnand %p1177_p6, %p1427_p5  ;;  %p1186_p13 = por %p1185_p12, %p1184_p9 }
  0x56   : > { %p1180_p8 = pneg %p1179_p7 }
  0x58   : > { %p1187_p2 = pnand %p1186_p13, %p1180_p8 }
  0x5a   : > { %1190 = shalt.err (!%p1187_p2)
}
  0x5b   : > { %s1306_s23 = smov 256   ;;  %s1307_s14 = smov 16  }
  0x5c   : > { %1041 = dma.hbm_to_vmem [thread:$0]  (!%p1413_p3), %s1645_s2, 2048, %s1417_s22, [#allocation6], %s1306_s23, %s1306_s23, %s1307_s14  }
  0x5d   : > { %s1308_s26 = smov [#allocation10]   ;;  %s1646_s5 = sld [smem:[#allocation25_spill]] }
  0x5e   : > { %s231_s27 = sshll.u32 %s1308_s26, 4  ;;  %s232_s27 = int_to_ptr.vmem [resolvable:$true] %s231_s27 }
  0x63   : > { %s1191_s13 = scalar_lea.hbm %s1646_s5, 2048 }
  0x64   : > { %p1192_p10 = scmp.ne.s32.totalorder %s1646_s5, %s1191_s13  ;;  %p1198_p1 = scmp.lt.u32.totalorder %s1191_s13, %s1646_s5 }
  0x66   : > { %p1194_p11 = pnand %p1192_p10, %p1427_p5 }
  0x68   : > { %p1195_p0 = pneg %p1194_p11 }
  0x6a   : > { %p1200_p4 = pnand %p1198_p1, %p1195_p0 }
  0x6c   : > { %1203 = shalt.err (!%p1200_p4)
}
  0x6d   : > { %s1204_s22 = scalar_lea.vmem %s232_s27, 2048  ;;  %p1212_p9 = scmp.lt.s32.totalorder %s232_s27, %s232_s27 }
  0x6e   : > { %p1205_p6 = scmp.ne.s32.totalorder %s232_s27, %s1204_s22  ;;  %p1213_p12 = scmp.lt.s32.totalorder %s1204_s22, %s1204_s22 }
  0x70   : > { %p1207_p7 = pnand %p1205_p6, %p1427_p5  ;;  %p1214_p13 = por %p1213_p12, %p1212_p9 }
  0x72   : > { %p1208_p8 = pneg %p1207_p7 }
  0x74   : > { %p1215_p2 = pnand %p1214_p13, %p1208_p8 }
  0x76   : > { %1218 = shalt.err (!%p1215_p2)
}
  0x77   : > { %s1647_s18 = smov 8   ;;  %s1648_s23 = smov 128  }
  0x78   : > { %1047 = dma.hbm_to_vmem [thread:$0]  (!%p1413_p3), %s1646_s5, 2048, %s232_s27, [#allocation9], %s1648_s23, %s1648_s23, %s1647_s18  }
  0x79   : > { %p1649_p10 = scmp.ne.s32.totalorder %s1641_s17, 0 }
  0x7a   : > { %p1650_p5 = scmp.eq.s32.totalorder (!%p1649_p10), %s1377_s9, 0 }
  0x7b   : > { %259 = sbr.rel (%p1649_p10) target bundleno = 980 (0x3d4), region = 44 }
  0x82   : > { %1270 = dma.done.wait (%p1650_p5), [#allocation6], 2048   ;;  %p1651_p11 = pmov %p1650_p5 }
  0x83   : > { %p1652_p0 = pmov %p1650_p5 }
  0x84   : > { %1272 = vsyncadd (%p1651_p11), [#allocation6], 4294965248 }
  0x85   : > { %1274 = dma.done.wait (%p1652_p0), [#allocation9], 6144   ;;  %p1653_p1 = pmov %p1652_p0 }
  0x86   : > { %s1622_s20 = sand.u32 1, %s1287_s0   ;;  %s830_s28 = sshll.u32 %s1377_s9, 1 }
  0x87   : > { %1276 = vsyncadd (%p1653_p1), [#allocation9], 4294961152  ;;  %s829_s17 = sshll.u32 %s1622_s20, 4  ;;  %p298_p3 = scmp.lt.s32.totalorder %s830_s28, 3 }
  0x88   : > { %s1654_s1 = sld [smem:[#allocation22_spill]]  ;;  %s1509_s27 = scalar_lea.vmem [#allocation11], %s829_s17 }
  0x89   : > { %s1668_s28 = smov (!%p298_p3, %s830_s28), 3  ;;  %s1511_s10 = smov 0  }
  0x8a   : > { %s831_s14 = sshll.u32 %s1668_s28, 3 }
  0x8e   : > { %s1507_s26 = scalar_lea.vmem %s1654_s1, %s831_s14 }
  0x8f LB: >> { %s832_s12 = sshll.u32 %s1377_s9, 4  ;;  %v408_v11 = vlaneseq  ;;  %s1299_s10 = sphi %s1511_s10, %s309_s10  }
  0x90   : >> { %s311_s13 = sadd.s32 %s1299_s10, %s832_s12 }
  0x91   : >> { %s1518_s19 = sshll.u32 %s311_s13, 3  ;;  %vm410_vm0 = vcmp.lt.s32.totalorder %v408_v11, 256 }
  0x92   : >> { %s313_s22 = sld [smem:[#allocation4 + %s1518_s19]]  ;;  %s324_s18 = sadd.s32 1, %s1518_s19 }
  0x93   : >> { %s325_s23 = sld [smem:[#allocation4 + %s324_s18]]  ;;  %s336_s3 = sadd.s32 2, %s1518_s19 }
  0x94   : >> { %s337_s21 = sld [smem:[#allocation4 + %s336_s3]]  ;;  %s348_s28 = sadd.s32 3, %s1518_s19 }
  0x95   : >> { %s1524_s17 = sld [smem:[#allocation4 + %s348_s28]]  ;;  %s360_s14 = sadd.s32 4, %s1518_s19 }
  0x96   : >> { %s1527_s24 = sld [smem:[#allocation4 + %s360_s14]]  ;;  %s372_s25 = sadd.s32 5, %s1518_s19 }
  0x97   : >> { %s1530_s12 = sld [smem:[#allocation4 + %s372_s25]] }
  0x98   : >> { %s314_s20 = sshra.s32 %s313_s22, 3  ;;  %s317_s1 = sand.u32 7, %s313_s22 }
  0x99   : >> { %s859_s2 = sshll.u32 %s314_s20, 4  ;;  %s326_s5 = sshra.s32 %s325_s23, 3 }
  0x9a   : >> { %s320_s30 = sadd.s32 %s859_s2, %s317_s1  ;;  %s329_s18 = sand.u32 7, %s325_s23 }
  0x9b   : >> { %s860_s11 = sshll.u32 %s326_s5, 4  ;;  %s321_s3 = scalar_lea.vmem [#allocation5], %s320_s30 }
  0x9c   : >> { %v322_v0 = vld [vmem:[%s321_s3] ss:$8 sm:$0x3]  ;;  %s332_s28 = sadd.s32 %s860_s11, %s329_s18  ;;  %s338_s14 = sshra.s32 %s337_s21, 3 }
  0x9d   : >> { %s341_s16 = sand.u32 7, %s337_s21  ;;  %s333_s29 = scalar_lea.vmem [#allocation5], %s332_s28 }
  0x9e   : >> { %v334_v1 = vld [vmem:[%s333_s29] ss:$8 sm:$0x3]  ;;  %s861_s25 = sshll.u32 %s338_s14, 4  ;;  %s350_s13 = sshra.s32 %s1524_s17, 3 }
  0x9f   : >> { %v335_v2 = vadd.f32 %v334_v1, %v322_v0  ;;  %s344_s20 = sadd.s32 %s861_s25, %s341_s16  ;;  %s353_s22 = sand.u32 7, %s1524_s17 }
  0xa0   : >> { %s862_s8 = sshll.u32 %s350_s13, 4  ;;  %s345_s1 = scalar_lea.vmem [#allocation5], %s344_s20 }
  0xa1   : >> { %v346_v3 = vld [vmem:[%s345_s1] ss:$8 sm:$0x3]  ;;  %s356_s2 = sadd.s32 %s862_s8, %s353_s22  ;;  %s362_s5 = sshra.s32 %s1527_s24, 3 }
  0xa2   : >> { %v347_v4 = vadd.f32 %v346_v3, %v335_v2  ;;  %s365_s30 = sand.u32 7, %s1527_s24  ;;  %s357_s11 = scalar_lea.vmem [#allocation5], %s356_s2 }
  0xa3   : >> { %v358_v5 = vld [vmem:[%s357_s11] ss:$8 sm:$0x3]  ;;  %s863_s29 = sshll.u32 %s362_s5, 4  ;;  %s374_s23 = sshra.s32 %s1530_s12, 3 }
  0xa4   : >> { %s368_s21 = sadd.s32 %s863_s29, %s365_s30  ;;  %s377_s18 = sand.u32 7, %s1530_s12  ;;  %v359_v6 = vadd.f32 %v358_v5, %v347_v4 }
  0xa5   : >> { %s864_s16 = sshll.u32 %s374_s23, 4  ;;  %s369_s17 = scalar_lea.vmem [#allocation5], %s368_s21 }
  0xa6   : >> { %v370_v7 = vld [vmem:[%s369_s17] ss:$8 sm:$0x3]  ;;  %s380_s13 = sadd.s32 %s864_s16, %s377_s18  ;;  %s1655_s3 = sadd.s32 6, %s1518_s19 }
  0xa7   : >> { %s385_s28 = sld [smem:[#allocation4 + %s1655_s3]]  ;;  %s396_s8 = sadd.s32 7, %s1518_s19  ;;  %v371_v8 = vadd.f32 %v370_v7, %v359_v6 }
  0xa8   : >> { %s397_s14 = sld [smem:[#allocation4 + %s396_s8]]  ;;  %s381_s25 = scalar_lea.vmem [#allocation5], %s380_s13 }
  0xa9   : >> { %v382_v9 = vld [vmem:[%s381_s25] ss:$8 sm:$0x3]  ;;  %s412_s24 = sshra.s32 %s1299_s10, 3  ;;  %s415_s20 = sand.u32 7, %s1299_s10 }
  0xaa   : >> { %v383_v10 = vadd.f32 %v382_v9, %v371_v8  ;;  %s867_s5 = sshll.u32 %s412_s24, 4  ;;  %s309_s10 = sadd.s32 1, %s1299_s10  }
  0xab   : >> { %s418_s21 = sadd.s32 %s867_s5, %s415_s20  ;;  %p306_p4 = scmp.ge.s32.totalorder %s309_s10, 16  }
  0xac   : >> { %s419_s16 = scalar_lea.vmem [#allocation2], %s418_s21  ;;  %v446_v16 = vld [vmem:[#allocation8 + $0x80] sm:$0xff] (%p306_p4)  ;;  %v447_v17 = vld [vmem:[#allocation8 + $0x88] sm:$0xff] (%p306_p4)  ;;  %v448_v21 = vld [vmem:[#allocation8 + $0x90] sm:$0xff] (%p306_p4)  ;;  %v1309_v23 = vmov (%p306_p4), 0   ;;  %s868_s3 = sshll.u32 (%p306_p4), %s1377_s9, 8 }
  0xad   : >> { %s386_s22 = sshra.s32 %s385_s28, 3  ;;  %s389_s1 = sand.u32 7, %s385_s28  ;;  %v430_v18 = vld [vmem:[#allocation8] sm:$0xff] (%p306_p4)  ;;  %v960_v19 = vpack.c.bf16 (%p306_p4), %v447_v17, %v446_v16  ;;  %v431_v20 = vld [vmem:[#allocation8 + $0x8] sm:$0xff] (%p306_p4)  ;;  %v449_v22 = vld [vmem:[#allocation8 + $0x98] sm:$0xff] (%p306_p4)  ;;  %1110 = vset.pattern.permute.xlu0 (%p306_p4), %v1309_v23 }
  0xae   : >> { %s865_s2 = sshll.u32 %s386_s22, 4  ;;  %s398_s30 = sshra.s32 %s397_s14, 3  ;;  %v962_v24 = vpack.c.bf16 (%p306_p4), %v431_v20, %v430_v18  ;;  %v964_v25 = vpack.c.bf16 (%p306_p4), %v449_v22, %v448_v21  ;;  %v432_v26 = vld [vmem:[#allocation8 + $0x10] sm:$0xff] (%p306_p4)  ;;  %v433_v27 = vld [vmem:[#allocation8 + $0x18] sm:$0xff] (%p306_p4)  ;;  %v450_v28 = vld [vmem:[#allocation8 + $0xa0] sm:$0xff] (%p306_p4) }
  0xaf   : >> { %s392_s12 = sadd.s32 %s865_s2, %s389_s1  ;;  %s401_s11 = sand.u32 7, %s397_s14  ;;  %961 = vmatprep.subr.bf16.mxu0 (%p306_p4), %v960_v19  ;;  %v451_v29 = vld [vmem:[#allocation8 + $0xa8] sm:$0xff] (%p306_p4)  ;;  %v966_v30 = vpack.c.bf16 (%p306_p4), %v433_v27, %v432_v26  ;;  %v434_v32 = vld [vmem:[#allocation8 + $0x20] sm:$0xff] (%p306_p4)  ;;  %v452_v34 = vld [vmem:[#allocation8 + $0xb0] sm:$0xff] (%p306_p4) }
  0xb0   : >> { %s393_s29 = scalar_lea.vmem [#allocation5], %s392_s12  ;;  %s866_s23 = sshll.u32 %s398_s30, 4  ;;  %963 = vmatpush3.bf16.msra.mxu0 (%p306_p4), %v962_v24  ;;  %v968_v31 = vpack.c.bf16 (%p306_p4), %v451_v29, %v450_v28  ;;  %v435_v33 = vld [vmem:[#allocation8 + $0x28] sm:$0xff] (%p306_p4)  ;;  %v453_v35 = vld [vmem:[#allocation8 + $0xb8] sm:$0xff] (%p306_p4)  ;;  %v436_v38 = vld [vmem:[#allocation8 + $0x30] sm:$0xff] (%p306_p4) }
  0xb1   : >> { %v394_v12 = vld [vmem:[%s393_s29] ss:$8 sm:$0x3]  ;;  %s404_s19 = sadd.s32 %s866_s23, %s401_s11  ;;  %308 = sbr.rel (!%p306_p4) target bundleno = 143 (0x8f), region = 108  ;;  %965 = vmatprep.subr.bf16.mxu0 (%p306_p4), %v964_v25  ;;  %v970_v36 = vpack.c.bf16 (%p306_p4), %v435_v33, %v434_v32  ;;  %v972_v37 = vpack.c.bf16 (%p306_p4), %v453_v35, %v452_v34  ;;  %v437_v39 = vld [vmem:[#allocation8 + $0x38] sm:$0xff] (%p306_p4)  ;;  %v562_v51 = vld [vmem:[#allocation10 + $0x10] sm:$0xff] (%p306_p4) }
  0xb2   : >> { %v395_v13 = vadd.f32 %v394_v12, %v383_v10  ;;  %s405_s18 = scalar_lea.vmem [#allocation5], %s404_s19  ;;  %v454_v40 = vld [vmem:[#allocation8 + $0xc0] sm:$0xff] (%p306_p4)  ;;  %v455_v41 = vld [vmem:[#allocation8 + $0xc8] sm:$0xff] (%p306_p4)  ;;  %v974_v45 = vpack.c.bf16 (%p306_p4), %v437_v39, %v436_v38  ;;  %v563_v52 = vld [vmem:[#allocation10 + $0x18] sm:$0xff] (%p306_p4)  ;;  %s694_s28 = sshll.u32 (%p306_p4), %s1509_s27, 4  ;;  %s1563_s28 = int_to_ptr.vmem [resolvable:$true] %s694_s28 }
  0xb3   : >> { %v406_v14 = vld [vmem:[%s405_s18] ss:$8 sm:$0x3]  ;;  %v976_v49 = vpack.c.bf16 (%p306_p4), %v455_v41, %v454_v40  ;;  %v456_v53 = vld [vmem:[#allocation8 + $0xd0] sm:$0xff] (%p306_p4)  ;;  %v457_v54 = vld [vmem:[#allocation8 + $0xd8] sm:$0xff] (%p306_p4)  ;;  %v996_v56 = vpack.c.bf16 (%p306_p4), %v563_v52, %v562_v51  ;;  %s1561_s25 = scalar_lea.hbm (%p306_p4), %s1616_s7, %s868_s3  ;;  %s1656_s24 = sand.u32 (%p306_p4), 1, %s1287_s0  }
  0xb4   : >> { %v407_v15 = vadd.f32 %v406_v14, %v395_v13  ;;  %967 = vmatpush3.bf16.msra.mxu0 (%p306_p4), %v966_v30  ;;  %v438_v43 = vld [vmem:[#allocation8 + $0x40] sm:$0xff] (%p306_p4)  ;;  %v439_v44 = vld [vmem:[#allocation8 + $0x48] sm:$0xff] (%p306_p4)  ;;  %v980_v60 = vpack.c.bf16 (%p306_p4), %v457_v54, %v456_v53  ;;  %v440_v61 = vld [vmem:[#allocation8 + $0x50] sm:$0xff] (%p306_p4)  ;;  %s1568_s20 = scalar_lea.sflag (%p306_p4), [#allocation7], %s1656_s24  ;;  %s1219_s9 = scalar_lea.vmem (%p306_p4), %s1563_s28, 256 }
  0xb5   : > { %969 = vmatprep.subr.bf16.mxu0 (%p306_p4), %v968_v31  ;;  %v426_v46 = vld [vmem:[%s1507_s26] sm:$0xff] (%p306_p4)  ;;  %v427_v47 = vld [vmem:[%s1507_s26 + $0x8] sm:$0xff] (%p306_p4)  ;;  %v978_v59 = vpack.c.bf16 (%p306_p4), %v439_v44, %v438_v43  ;;  %v441_v62 = vld [vmem:[#allocation8 + $0x58] sm:$0xff] (%p306_p4)  ;;  %p1220_p6 = scmp.ne.s32.totalorder (%p306_p4), %s1563_s28, %s1219_s9  ;;  %p1657_p7 = scmp.ne.s32.totalorder (%p306_p4), %s1638_s15, 0 }
  0xb6   : >> { %420 = vst.msk [vmem:[%s419_s16] ss:$8 sm:$0x3] %vm410_vm0, %v407_v15  ;;  %v560_v48 = vld [vmem:[#allocation10] sm:$0xff] (%p306_p4)  ;;  %1111 = vrcp.f32 (%p306_p4), %v426_v46  ;;  %v561_v50 = vld [vmem:[#allocation10 + $0x8] sm:$0xff] (%p306_p4)  ;;  %v566_v2 = vld [vmem:[#allocation10 + $0x30] sm:$0xff] (%p306_p4)  ;;  %v982_v4 = vpack.c.bf16 (%p306_p4), %v441_v62, %v440_v61 }
  0xb7   : > { %v992_v55 = vpack.c.bf16 (%p306_p4), %v561_v50, %v560_v48  ;;  %1113 = vrcp.f32 (%p306_p4), %v427_v47  ;;  %v564_v57 = vld [vmem:[#allocation10 + $0x20] sm:$0xff] (%p306_p4)  ;;  %v565_v58 = vld [vmem:[#allocation10 + $0x28] sm:$0xff] (%p306_p4)  ;;  %v567_v3 = vld [vmem:[#allocation10 + $0x38] sm:$0xff] (%p306_p4)  ;;  %p1221_p8 = pnand (%p306_p4), %p1220_p6, %p1657_p7  ;;  %s1310_s22 = smov (%p306_p4), [#allocation11]  }
  0xb8   : > { %971 = vmatpush3.bf16.msra.mxu0 %v970_v36  ;;  %v458_v63 = vld [vmem:[#allocation8 + $0xe0] sm:$0xff]  ;;  %v459_v0 = vld [vmem:[#allocation8 + $0xe8] sm:$0xff]  ;;  %v1000_v1 = vpack.c.bf16 %v565_v58, %v564_v57  ;;  %v460_v8 = vld [vmem:[#allocation8 + $0xf0] sm:$0xff]  ;;  %v1004_v10 = vpack.c.bf16 %v567_v3, %v566_v2  ;;  %s1223_s1 = sshll.u32 %s1310_s22, 4  ;;  %s1224_s1 = int_to_ptr.vmem [resolvable:$false] %s1223_s1 }
  0xb9   : > { %973 = vmatprep.subr.bf16.mxu0 %v972_v37  ;;  %993 = vmatprep.subr.bf16.mxu1 %v992_v55  ;;  %v984_v5 = vpack.c.bf16 %v459_v0, %v458_v63  ;;  %v442_v6 = vld [vmem:[#allocation8 + $0x60] sm:$0xff]  ;;  %v443_v7 = vld [vmem:[#allocation8 + $0x68] sm:$0xff]  ;;  %v461_v9 = vld [vmem:[#allocation8 + $0xf8] sm:$0xff]  ;;  %p1222_p9 = pneg %p1221_p8  ;;  %s1225_s2 = scalar_lea.vmem %s1224_s1, 512 }
  0xba   : > { %995 = vmatpush3.bf16.msra.mxu1 %v992_v55  ;;  %v568_v12 = vld [vmem:[#allocation10 + $0x40] sm:$0xff]  ;;  %v569_v13 = vld [vmem:[#allocation10 + $0x48] sm:$0xff]  ;;  %v986_v14 = vpack.c.bf16 %v443_v7, %v442_v6  ;;  %v988_v16 = vpack.c.bf16 %v461_v9, %v460_v8  ;;  %v444_v17 = vld [vmem:[#allocation8 + $0x70] sm:$0xff]  ;;  %p1226_p12 = scmp.lt.s32.totalorder %s1563_s28, %s1224_s1  ;;  %p1227_p13 = scmp.lt.s32.totalorder %s1225_s2, %s1219_s9 }
  0xbb   : > { %997 = vmatprep.subr.bf16.mxu1 %v996_v56  ;;  %v445_v18 = vld [vmem:[#allocation8 + $0x78] sm:$0xff]  ;;  %v1008_v19 = vpack.c.bf16 %v569_v13, %v568_v12  ;;  %v570_v24 = vld [vmem:[#allocation10 + $0x50] sm:$0xff]  ;;  %v572_v27 = vld [vmem:[#allocation10 + $0x60] sm:$0xff] }
  0xbc   : > { %975 = vmatpush3.bf16.msra.mxu0 %v974_v45  ;;  %v990_v20 = vpack.c.bf16 %v445_v18, %v444_v17  ;;  %v571_v25 = vld [vmem:[#allocation10 + $0x58] sm:$0xff]  ;;  %v573_v28 = vld [vmem:[#allocation10 + $0x68] sm:$0xff]  ;;  %v574_v30 = vld [vmem:[#allocation10 + $0x70] sm:$0xff]  ;;  %p1228_p2 = por %p1227_p13, %p1226_p12 }
  0xbd   : > { %v423_v42 = vld [vmem:[#allocation2 + $0x8] sm:$0xff]  ;;  %977 = vmatprep.subr.bf16.mxu0 %v976_v49  ;;  %v422_v21 = vld [vmem:[#allocation2] sm:$0xff]  ;;  %v425_v22 = vld [vmem:[#allocation2 + $0x18] sm:$0xff]  ;;  %v1012_v26 = vpack.c.bf16 %v571_v25, %v570_v24  ;;  %v1016_v29 = vpack.c.bf16 %v573_v28, %v572_v27 }
  0xbe   : > { %526 = vmatprep.mubr.f32.mxu0 %v423_v42  ;;  %999 = vmatpush3.bf16.msra.mxu1 %v996_v56  ;;  %v424_v23 = vld [vmem:[#allocation2 + $0x10] sm:$0xff]  ;;  %v575_v31 = vld [vmem:[#allocation10 + $0x78] sm:$0xff]  ;;  %v852_v37 = vld [vmem:[%s1613_s4] ss:$0 sm:$0xff]  ;;  %p1229_p10 = pnand %p1228_p2, %p1222_p9 }
  0xbf   : > { %1001 = vmatprep.subr.bf16.mxu1 %v1000_v1  ;;  %v1020_v32 = vpack.c.bf16 %v575_v31, %v574_v30  ;;  %v853_v48 = vld [vmem:[%s1615_s6] ss:$0 sm:$0xff] }
  0xc0   : > { %979 = vmatpush3.bf16.msra.mxu0 %v978_v59  ;;  %v1112_v11 = vpop.eup %1111 }
  0xc1   : > { %981 = vmatprep.subr.bf16.mxu0 %v980_v60  ;;  %539 = vperm.xlu0 %1110, %v1112_v11   ;;  %v1114_v15 = vpop.eup %1113 }
  0xc2   : > { %1003 = vmatpush3.bf16.msra.mxu1 %v1000_v1 }
  0xc3   : > { %1005 = vmatprep.subr.bf16.mxu1 %v1004_v10 }
  0xc4   : > { %983 = vmatpush3.bf16.msra.mxu0 %v982_v4 }
  0xc5   : > { %985 = vmatprep.subr.bf16.mxu0 %v984_v5  ;;  %544 = vperm.xlu0 %1110, %v1114_v15  }
  0xc6   : > { %1007 = vmatpush3.bf16.msra.mxu1 %v1004_v10 }
  0xc7   : > { %1009 = vmatprep.subr.bf16.mxu1 %v1008_v19 }
  0xc8   : > { %987 = vmatpush3.bf16.msra.mxu0 %v986_v14 }
  0xc9   : > { %989 = vmatprep.subr.bf16.mxu0 %v988_v16 }
  0xca   : > { %1011 = vmatpush3.bf16.msra.mxu1 %v1008_v19 }
  0xcb   : > { %1013 = vmatprep.subr.bf16.mxu1 %v1012_v26 }
  0xcc   : > { %991 = vmatpush3.bf16.msra.mxu0 %v990_v20 }
  0xce   : > { %1015 = vmatpush3.bf16.msra.mxu1 %v1012_v26 }
  0xcf   : > { %527 = vmatmul.mubr.f32.vlgmr.msra.gmra.mrb[0].mxu0 %v422_v21  ;;  %1017 = vmatprep.subr.bf16.mxu1 %v1016_v29 }
  0xd0   : > { %531 = vmatprep.mubr.f32.mxu0 %v425_v22 }
  0xd2   : > { %1019 = vmatpush3.bf16.msra.mxu1 %v1016_v29 }
  0xd3   : > { %532 = vmatmul.mubr.f32.gmra.mrb[2].mxu0 %v424_v23  ;;  %1021 = vmatprep.subr.bf16.mxu1 %v1020_v32 }
  0xd6   : > { %1023 = vmatpush3.bf16.msra.mxu1 %v1020_v32 }
 0x140   : > { %v540_v34 = vpop.permute.xlu0 %539 }
 0x144   : > { %v545_v43 = vpop.permute.xlu0 %544 }
 0x1a2   : > { %v901_v33 = vpop.f32.mrb[0].mxu0 }
 0x1a3   : > { %v902_v35 = vpop.f32.mrb[1].mxu0 }
 0x1a4   : > { %v903_v36 = vadd.f32 %v902_v35, %v901_v33 }
 0x1a6   : > { %v904_v38 = vpop.f32.mrb[2].mxu0  ;;  %v547_v39 = vmul.f32 %v903_v36, %v540_v34 }
 0x1a7   : > { %v905_v40 = vpop.f32.mrb[3].mxu0 }
 0x1a8   : > { %v906_v41 = vadd.f32 %v905_v40, %v904_v38  ;;  %v556_v42 = vadd.f32 %v852_v37, %v547_v39 }
 0x1aa   : > { %v548_v44 = vmul.f32 %v906_v41, %v545_v43  ;;  %v558_v45 = vmax.f32 %v556_v42, 0.0 }
 0x1ac   : > { %v557_v46 = vadd.f32 %v852_v37, %v548_v44  ;;  %957 = vmatprep.mubr.f32.mxu1 %v558_v45 }
 0x1ae   : > { %v559_v47 = vmax.f32 %v557_v46, 0.0 }
 0x1b0   : > { %958 = vmatmul.mubr.f32.vlgmr.msra.gmra.mrb[0].mxu1 %v559_v47 }
 0x283   : > { %v959_v49 = vpop.f32.mrb[0].mxu1 }
 0x284   : > { %v649_v50 = vpop.f32.mrb[1].mxu1  ;;  %v655_v52 = vadd.f32 %v959_v49, %v853_v48 }
 0x285   : > { %v650_v51 = vadd.f32 %v853_v48, %v649_v50 }
 0x287   : > { %658 = vmax.xlane.f32.xlu1 %v650_v51 }
 0x28b   : > { %660 = vmax.xlane.f32.xlu1 %v655_v52 }
 0x314   : > { %v659_v53 = vpop.xlane.xlu1 %658 }
 0x315   : > { %v662_v54 = vsub.f32 %v650_v51, %v659_v53 }
 0x317   : > { %v664_v55 = vmul.f32 1.442695, %v662_v54 }
 0x318   : > { %v661_v56 = vpop.xlane.xlu1 %660 }
 0x319   : > { %1115 = vpow2.f32 %v664_v55  ;;  %v663_v57 = vsub.f32 %v655_v52, %v661_v56 }
 0x31b   : > { %v666_v58 = vmul.f32 1.442695, %v663_v57 }
 0x31d   : > { %1117 = vpow2.f32 %v666_v58 }
 0x323   : > { %v1116_v59 = vpop.eup %1115 }
 0x324   : > { %668 = vadd.xlane.f32.xlu0 %v1116_v59 }
 0x327   : > { %v1118_v60 = vpop.eup %1117 }
 0x328   : > { %670 = vadd.xlane.f32.xlu1 %v1118_v60 }
 0x3b1   : > { %v669_v61 = vpop.xlane.xlu0 %668 }
 0x3b2   : > { %1119 = vlog2.f32 %v669_v61 }
 0x3b5   : > { %v671_v62 = vpop.xlane.xlu1 %670 }
 0x3b6   : > { %1121 = vlog2.f32 %v671_v62 }
 0x3bc   : > { %v1120_v63 = vpop.eup %1119 }
 0x3bd   : > { %v673_v0 = vmul.f32 0.6931472, %v1120_v63 }
 0x3bf   : > { %v676_v1 = vsub.f32 %v662_v54, %v673_v0 }
 0x3c0   : > { %v1122_v2 = vpop.eup %1121 }
 0x3c1   : > { %678 = vst [vmem:[%s1509_s27] sm:$0xff] %v676_v1  ;;  %v675_v3 = vmul.f32 0.6931472, %v1122_v2 }
 0x3c3   : > { %v677_v4 = vsub.f32 %v663_v57, %v675_v3 }
 0x3c5   : > { %679 = vst [vmem:[%s1509_s27 + $0x8] sm:$0xff] %v677_v4 }
 0x3c6   : > { %1232 = shalt.err (!%p1229_p10)
}
 0x3c7   : > { %s1233_s27 = scalar_lea.hbm %s1561_s25, 256  ;;  %s1237_s30 = scalar_lea.hbm %s1616_s7, 512 }
 0x3c8   : > { %p1234_p5 = scmp.ne.s32.totalorder %s1561_s25, %s1233_s27  ;;  %p1238_p1 = scmp.lt.u32.totalorder %s1561_s25, %s1616_s7 }
 0x3c9   : > { %p1239_p3 = scmp.lt.u32.totalorder %s1237_s30, %s1233_s27  ;;  %p1241_p6 = scmp.lt.u32.totalorder %s1233_s27, %s1561_s25 }
 0x3ca   : > { %p1235_p11 = pnand %p1234_p5, %p1657_p7 }
 0x3cb   : > { %p1240_p4 = por %p1239_p3, %p1238_p1 }
 0x3cc   : > { %p1236_p0 = pneg %p1235_p11 }
 0x3cd   : > { %p1242_p8 = por %p1241_p6, %p1240_p4 }
 0x3cf   : > { %p1243_p9 = pnand %p1242_p8, %p1236_p0 }
 0x3d1   : > { %1246 = shalt.err (!%p1243_p9)
}
 0x3d2   : > { %s1311_s23 = smov 128   ;;  %s1312_s21 = smov 8  }
 0x3d3   : > { %1036 = dma.vmem_to_hbm [thread:$0]  (%p1657_p7), %s1563_s28, 256, %s1561_s25, %s1568_s20, %s1311_s23, %s1311_s23, %s1312_s21  }
 0x3d4 PF: > { %s1658_s19 = sld [smem:[#allocation18_spill]]  ;;  %s1659_s18 = sld [smem:[#allocation16_spill]] }
 0x3d5   : > { %s1660_s16 = sld [smem:[#allocation21_spill]] }
 0x3da   : > { %p1058_p12 = scmp.ge.s32.totalorder %s1658_s19, 2  ;;  %s709_s26 = sand.u32 1, %s1659_s18  }
 0x3db   : > { %p1661_p13 = scmp.ne.s32.totalorder %s1660_s16, 0  ;;  %s710_s10 = scalar_lea.sflag [#allocation7], %s709_s26 }
 0x3dd   : > { %p1049_p2 = pnand %p1058_p12, %p1661_p13 }
 0x3df   : > { %1278 = dma.done.wait (!%p1049_p2), %s710_s10, 256  }
 0x3e0   : > { %1280 = vsyncadd (!%p1049_p2), %s710_s10, 4294967040  ;;  %s1662_s8 = sld [smem:[#allocation19_spill]]  ;;  %s1663_s17 = sld [smem:[#allocation17_spill]] }
 0x3e1   : > { %s1664_s30 = sld [smem:[#allocation20_spill]]  ;;  %s1665_s29 = smov %s1287_s0 }
 0x3e6   : > { %p25_p10 = scmp.ge.s32.totalorder %s1662_s8, 4   ;;  %s1666_s0 = smov %s1663_s17 }
 0x3e8   :  { %27 = sbr.rel (!%p25_p10) target bundleno = 22 (0x16), region = 119 }
 0x3ef   :  { %715 = vsyncpa [#allocation6], 1 }
 0x3f0   :  { %717 = vsyncpa [#allocation6 + $0x1], 1 }
 0x3f1   :  { %718 = vsyncpa [#allocation9], 1 }
 0x3f2   :  { %719 = vsyncpa [#allocation7], 1 }
 0x3f3   :  { %721 = vsyncpa [#allocation7 + $0x1], 1 }

</bundles_post_ra>
